<compile_context>
chip_gen: v7x
topology: tpu7x:2x2x1
jax: 0.10.0
libtpu: 0.0.40
codegen_flags: <defaults>
</compile_context>

<pallas_src>
import jax
import jax.numpy as jnp
from jax.experimental import pallas as pl
from jax.experimental.pallas import tpu as pltpu


def _round_up(x, m):
    return ((x + m - 1) // m) * m


def _cdiv(a, b):
    return (a + b - 1) // b


# ----------------------------------------------------------------------------
# Kernels
# ----------------------------------------------------------------------------
def _make_resident_kernel(inline_prep):
    """Weight-resident kernel: full K per tile, grid = (N strips, M row tiles)."""

    def kernel(thr_ref, x_ref, w_ref, mask_ref, fixed_ref, b_ref, o_ref,
               w_eff_ref):
        def prep():
            w_raw = w_ref[...]                                     # (tn, K) f32
            w_eff = jnp.where(mask_ref[...] != 0, w_raw, fixed_ref[...])
            w_eff = jnp.where(jnp.abs(w_raw) < thr_ref[0], 0.0, w_eff)
            # Feed the MXU bf16 (native on all generations); accumulate f32.
            w_eff_ref[...] = w_eff.astype(w_eff_ref.dtype)

        if inline_prep:
            # Used when the M axis is megacore-"parallel": redo the (cheap)
            # prep every step so there is no cross-step scratch dependency.
            prep()
        else:
            # Weight/mask/fixed block index is constant along the inner M
            # axis, so the effective weight only has to be built once per N
            # strip.  NOTE: this hoist is only safe while axis 1 stays
            # "arbitrary" (never split across cores) — every core then
            # restarts the inner loop at m == 0.
            @pl.when(pl.program_id(1) == 0)
            def _():
                prep()

        # (tm, K) . (tn, K) contracted on K -> (tm, tn).  The RHS is consumed
        # in (N, K) layout natively by the MXU — no transpose/relayout, and
        # the output tile is lane-dense on N.
        y = jax.lax.dot_general(
            x_ref[...], w_eff_ref[...],
            dimension_numbers=(((1,), (1,)), ((), ())),
            preferred_element_type=jnp.float32)
        o_ref[...] = (y + b_ref[...]).astype(o_ref.dtype)

    return kernel


def _kblocked_kernel(thr_ref, x_ref, w_ref, mask_ref, fixed_ref, b_ref, o_ref,
                     acc_ref):
    """K-blocked kernel: grid = (N, M, K), K innermost with f32 accumulator."""
    k = pl.program_id(2)

    @pl.when(k == 0)
    def _():
        acc_ref[...] = jnp.zeros_like(acc_ref)

    # Inline mask/threshold prep per (n, k) weight tile: ~4 VPU ops per weight
    # element vs tm MACs on the MXU, and megacore-safe (no scratch carry).
    w_raw = w_ref[...]                                             # (tn, tk) f32
    w_eff = jnp.where(mask_ref[...] != 0, w_raw, fixed_ref[...])
    w_eff = jnp.where(jnp.abs(w_raw) < thr_ref[0], 0.0, w_eff)

    acc_ref[...] += jax.lax.dot_general(
        x_ref[...], w_eff.astype(x_ref.dtype),
        dimension_numbers=(((1,), (1,)), ((), ())),
        preferred_element_type=jnp.float32)

    @pl.when(k == pl.num_programs(2) - 1)
    def _():
        o_ref[...] = (acc_ref[...] + b_ref[...]).astype(o_ref.dtype)


# ----------------------------------------------------------------------------
# Wrapper
# ----------------------------------------------------------------------------
_VMEM_BUDGET = 40 * 1024 * 1024   # conservative working-set budget (v7x: 64 MiB)
_VMEM_CEIL = 48 * 1024 * 1024     # never request more than this from Mosaic


def _pick_tm(M, tm):
    m_aligned = _round_up(M, 8)
    if tm is not None:
        return min(_round_up(tm, 8), m_aligned)
    if m_aligned <= 512:
        # Small-batch fast path: one M step, no padded rows, x fully
        # VMEM-resident across all N strips (its block index never changes).
        return m_aligned
    # Pick the multiple-of-8 tile in [256, 512] minimising padded rows
    # (ties broken toward the larger tile).
    return min(range(256, 513, 8), key=lambda t: (_round_up(M, t) - M, -t))


def _pick_tn(N, tn):
    n_aligned = _round_up(N, 128)
    if tn is None:
        tn = 256                                  # match v6e/v7x 256-wide MXU
    tn = min(_round_up(tn, 128), n_aligned)
    # v7x has 2 TensorCores and only the "parallel" N axis is sharded across
    # them: keep >= 2 N steps when that does not shrink the tile below 256.
    if _cdiv(n_aligned, tn) < 2 and n_aligned >= 512:
        tn = 256
    return tn


def linear_threshold(x, weight, mask, fixed, bias, threshold,
                     *, tm=None, tn=None, tk=None):
    """x:(M,K), weight/mask/fixed:(N,K) (nn.Linear layout), bias:(N,) -> (M,N)."""
    M, K = x.shape
    N, K2 = weight.shape
    assert K == K2 and bias.shape == (N,)

    out_bytes = jnp.dtype(x.dtype).itemsize
    tm = _pick_tm(M, tm)
    tn = _pick_tn(N, tn)
    assert tm % 8 == 0 and tn % 128 == 0

    m_pad = _round_up(M, tm)
    n_pad = _round_up(N, tn)

    def pad2(a, rows, cols):
        pr, pc = rows - a.shape[0], cols - a.shape[1]
        return jnp.pad(a, ((0, pr), (0, pc))) if (pr or pc) else a

    thr = jnp.asarray(threshold, dtype=jnp.float32).reshape((1,))
    b_p = bias if n_pad == N else jnp.pad(bias, (0, n_pad - N))
    b_p = b_p.reshape(1, n_pad).astype(jnp.float32)       # lane-dense bias row

    # Double-buffered-working-set estimate for the weight-resident path.
    resident_bytes = (2 * tm * K * 2                       # x (bf16)
                      + 2 * tn * K * (4 + 1 + 4)           # w f32 + mask i8 + fixed f32
                      + 2 * tm * tn * out_bytes            # output
                      + 2 * n_pad * 4                      # bias
                      + tn * K * 2)                        # w_eff scratch (bf16)

    use_resident = (tk is None) and (resident_bytes <= _VMEM_BUDGET)

    if use_resident:
        x_p = pad2(x, m_pad, K).astype(jnp.bfloat16)       # halve x HBM/VMEM traffic
        w_p = pad2(weight.astype(jnp.float32), n_pad, K)   # f32: exact threshold test
        f_p = pad2(fixed.astype(jnp.float32), n_pad, K)
        m_p = pad2(mask.astype(jnp.int8), n_pad, K)        # int8: 4x less traffic

        n_steps, m_steps = n_pad // tn, m_pad // tm
        # Single N strip but several M tiles: hoisting would force the M axis
        # to stay "arbitrary" and idle one v7x core — inline the prep instead.
        inline_prep = (n_steps == 1 and m_steps > 1)
        grid = (n_steps, m_steps)                          # N outer, M inner

        in_specs = [
            pl.BlockSpec(memory_space=pltpu.MemorySpace.SMEM),   # threshold scalar
            pl.BlockSpec((tm, K), lambda n, m: (m, 0)),          # x row tile
            pl.BlockSpec((tn, K), lambda n, m: (n, 0)),          # weight (resident over m)
            pl.BlockSpec((tn, K), lambda n, m: (n, 0)),          # mask
            pl.BlockSpec((tn, K), lambda n, m: (n, 0)),          # fixed
            pl.BlockSpec((1, tn), lambda n, m: (0, n)),          # bias
        ]
        out_spec = pl.BlockSpec((tm, tn), lambda n, m: (m, n))
        scratch = [pltpu.VMEM((tn, K), jnp.bfloat16)]
        kernel = _make_resident_kernel(inline_prep)
        semantics = (("parallel", "parallel") if inline_prep
                     else ("parallel", "arbitrary"))
        est = resident_bytes
        args = (thr, x_p, w_p, m_p, f_p, b_p)
    else:
        # K-blocked path: large K where full-K weight strips would blow the
        # VMEM budget (mandatory on v7x's 64 MiB), or tk forced by the caller.
        if tk is None:
            tk = 512
        tk = min(_round_up(tk, 128), _round_up(K, 128))

        def kblocked_bytes(tk_):
            return (2 * tm * tk_ * 2                       # x (bf16)
                    + 2 * tn * tk_ * (4 + 1 + 4)           # w + mask + fixed
                    + 2 * tm * tn * out_bytes              # output
                    + 2 * n_pad * 4                        # bias
                    + tm * tn * 4)                         # f32 accumulator

        while kblocked_bytes(tk) > _VMEM_BUDGET and tk > 128:
            tk = max(128, _round_up(tk // 2, 128))
        k_pad = _round_up(K, tk)

        x_p = pad2(x, m_pad, k_pad).astype(jnp.bfloat16)
        w_p = pad2(weight.astype(jnp.float32), n_pad, k_pad)
        f_p = pad2(fixed.astype(jnp.float32), n_pad, k_pad)
        m_p = pad2(mask.astype(jnp.int8), n_pad, k_pad)

        grid = (n_pad // tn, m_pad // tm, k_pad // tk)     # K innermost (reduction)
        in_specs = [
            pl.BlockSpec(memory_space=pltpu.MemorySpace.SMEM),   # threshold scalar
            pl.BlockSpec((tm, tk), lambda n, m, k: (m, k)),      # x
            pl.BlockSpec((tn, tk), lambda n, m, k: (n, k)),      # weight
            pl.BlockSpec((tn, tk), lambda n, m, k: (n, k)),      # mask
            pl.BlockSpec((tn, tk), lambda n, m, k: (n, k)),      # fixed
            pl.BlockSpec((1, tn), lambda n, m, k: (0, n)),       # bias
        ]
        out_spec = pl.BlockSpec((tm, tn), lambda n, m, k: (m, n))
        scratch = [pltpu.VMEM((tm, tn), jnp.float32)]
        kernel = _kblocked_kernel
        semantics = ("parallel", "parallel", "arbitrary")
        est = kblocked_bytes(tk)
        args = (thr, x_p, w_p, m_p, f_p, b_p)

    # Leave headroom for compiler-internal scratch; never request the whole
    # physical VMEM (v7x has only 64 MiB per TensorCore).
    vmem_limit = min(max(32 * 1024 * 1024, est + 8 * 1024 * 1024), _VMEM_CEIL)

    out = pl.pallas_call(
        kernel,
        out_shape=jax.ShapeDtypeStruct((m_pad, n_pad), x.dtype),
        grid_spec=pltpu.PrefetchScalarGridSpec(
            num_scalar_prefetch=0,
            grid=grid,
            in_specs=in_specs,
            out_specs=out_spec,
            scratch_shapes=scratch,
        ),
        compiler_params=pltpu.CompilerParams(
            dimension_semantics=semantics,
            vmem_limit_bytes=vmem_limit,
        ),
    )(*args)

    return out[:M, :N]


# ----------------------------------------------------------------------------
# Pure-JAX reference mirroring the PyTorch forward
# ----------------------------------------------------------------------------
def linear_threshold_ref(x, weight, mask, fixed, bias, threshold,
                         compute_dtype=jnp.float32):
    w_eff = jnp.where(mask, weight, fixed)
    w_eff = jnp.where(jnp.abs(weight) < threshold, 0.0, w_eff)
    y = jax.lax.dot_general(
        x.astype(compute_dtype), w_eff.astype(compute_dtype),
        (((1,), (1,)), ((), ())),
        preferred_element_type=jnp.float32)
    return y + bias


if __name__ == "__main__":
    key = jax.random.PRNGKey(0)

    def make_case(case_key, batch, in_features, out_features):
        k_w, k_b, k_m, k_f, k_x = jax.random.split(case_key, 5)
        bound = 1.0 / (in_features ** 0.5)
        weight = jax.random.uniform(k_w, (out_features, in_features),
                                    jnp.float32, -bound, bound)
        bias = jax.random.uniform(k_b, (out_features,), jnp.float32, -bound, bound)
        mask = jax.random.uniform(k_m, (out_features, in_features)) < 0.7
        fixed = jax.random.normal(k_f, (out_features, in_features),
                                  jnp.float32) * 0.05
        x = jax.random.normal(k_x, (batch, in_features), jnp.float32)
        return x, weight, mask, fixed, bias

    threshold = 0.05
    k1, k2 = jax.random.split(key)

    # Case 1: weight-resident path; batch deliberately not a power-of-two tile
    # multiple (exercises the no-padded-rows small-batch path).
    x, w, m, f, b = make_case(k1, 200, 128, 128)
    out = jax.block_until_ready(linear_threshold(x, w, m, f, b, threshold))
    assert out.shape == (200, 128)
    ref_bf16 = linear_threshold_ref(x, w, m, f, b, threshold, jnp.bfloat16)
    ref_f32 = linear_threshold_ref(x, w, m, f, b, threshold, jnp.float32)
    # Tight check vs a bf16-operand reference (same arithmetic as the kernel);
    # loose check vs the full-f32 reference (bf16 operands, f32 accumulation).
    assert jnp.allclose(out, ref_bf16, atol=2e-3, rtol=2e-3), "mismatch (case 1, bf16 ref)"
    assert jnp.allclose(out, ref_f32, atol=6e-2, rtol=6e-2), "mismatch (case 1, f32 ref)"

    # Case 2: force the K-blocked accumulator path (the large-K / v7x path).
    x, w, m, f, b = make_case(k2, 72, 256, 256)
    out = jax.block_until_ready(linear_threshold(x, w, m, f, b, threshold, tk=128))
    assert out.shape == (72, 256)
    ref_bf16 = linear_threshold_ref(x, w, m, f, b, threshold, jnp.bfloat16)
    ref_f32 = linear_threshold_ref(x, w, m, f, b, threshold, jnp.float32)
    assert jnp.allclose(out, ref_bf16, atol=2e-3, rtol=2e-3), "mismatch (case 2, bf16 ref)"
    assert jnp.allclose(out, ref_f32, atol=6e-2, rtol=6e-2), "mismatch (case 2, f32 ref)"

    print("KERNEL_OK")
</pallas_src>

<mosaic_0001>
module attributes {stable_mosaic.version = 11 : i64} {
  func.func @kernel(%arg0: i32, %arg1: i32, %arg2: memref<1xf32, #tpu.memory_space<smem>>, %arg3: memref<200x128xbf16, #tpu.memory_space<vmem>>, %arg4: memref<128x128xf32, #tpu.memory_space<vmem>>, %arg5: memref<128x128xi8, #tpu.memory_space<vmem>>, %arg6: memref<128x128xf32, #tpu.memory_space<vmem>>, %arg7: memref<1x128xf32, #tpu.memory_space<vmem>>, %arg8: memref<200x128xf32, #tpu.memory_space<vmem>>, %arg9: memref<128x128xbf16, #tpu.memory_space<vmem>>) attributes {dimension_semantics = [#tpu.dimension_semantics<parallel>, #tpu.dimension_semantics<arbitrary>], iteration_bounds = array<i64: 1, 1>, scalar_prefetch = 0 : i64, scratch_operands = 1 : i64, tpu.core_type = #tpu.core_type<tc>, window_params = [{transform_indices = @transform_0, window_bounds = array<i64: 1>}, {transform_indices = @transform_1, window_bounds = array<i64: 200, 128>}, {transform_indices = @transform_2, window_bounds = array<i64: 128, 128>}, {transform_indices = @transform_3, window_bounds = array<i64: 128, 128>}, {transform_indices = @transform_4, window_bounds = array<i64: 128, 128>}, {transform_indices = @transform_5, window_bounds = array<i64: 1, 128>}, {transform_indices = @transform_6, window_bounds = array<i64: 200, 128>}]} {
    %c0_i32 = arith.constant 0 : i32
    %0 = arith.cmpi eq, %arg1, %c0_i32 : i32
    %1 = arith.extui %0 : i1 to i32
    %c0_i32_0 = arith.constant 0 : i32
    %2 = arith.cmpi ne, %1, %c0_i32_0 : i32
    scf.if %2 {
      %c0_8 = arith.constant 0 : index
      %c0_9 = arith.constant 0 : index
      %10 = vector.load %arg4[%c0_8, %c0_9] : memref<128x128xf32, #tpu.memory_space<vmem>>, vector<128x128xf32>
      %c0_10 = arith.constant 0 : index
      %c0_11 = arith.constant 0 : index
      %11 = vector.load %arg5[%c0_10, %c0_11] : memref<128x128xi8, #tpu.memory_space<vmem>>, vector<128x128xi8>
      %c0_i8 = arith.constant 0 : i8
      %12 = vector.broadcast %c0_i8 : i8 to vector<128x128xi8>
      %13 = arith.cmpi ne, %11, %12 : vector<128x128xi8>
      %c0_12 = arith.constant 0 : index
      %c0_13 = arith.constant 0 : index
      %14 = vector.load %arg6[%c0_12, %c0_13] : memref<128x128xf32, #tpu.memory_space<vmem>>, vector<128x128xf32>
      %15 = arith.select %13, %10, %14 : vector<128x128xi1>, vector<128x128xf32>
      %16 = math.absf %10 : vector<128x128xf32>
      %c0_14 = arith.constant 0 : index
      %17 = memref.load %arg2[%c0_14] : memref<1xf32, #tpu.memory_space<smem>>
      %18 = vector.broadcast %17 : f32 to vector<128x128xf32>
      %19 = arith.cmpf olt, %16, %18 : vector<128x128xf32>
      %cst_15 = arith.constant 0.000000e+00 : f32
      %20 = vector.broadcast %cst_15 : f32 to vector<128x128xf32>
      %21 = arith.select %19, %20, %15 : vector<128x128xi1>, vector<128x128xf32>
      %22 = arith.truncf %21 : vector<128x128xf32> to vector<128x128xbf16>
      %c0_16 = arith.constant 0 : index
      %c0_17 = arith.constant 0 : index
      %23 = vector.load %arg9[%c0_16, %c0_17] : memref<128x128xbf16, #tpu.memory_space<vmem>>, vector<128x128xbf16>
      tpu.vector_store %arg9[%c0_16, %c0_17], %22 {strides = array<i32>} : memref<128x128xbf16, #tpu.memory_space<vmem>>, vector<128x128xbf16>,
    } else {
    }
    %c0 = arith.constant 0 : index
    %c0_1 = arith.constant 0 : index
    %3 = vector.load %arg3[%c0, %c0_1] : memref<200x128xbf16, #tpu.memory_space<vmem>>, vector<200x128xbf16>
    %c0_2 = arith.constant 0 : index
    %c0_3 = arith.constant 0 : index
    %4 = vector.load %arg9[%c0_2, %c0_3] : memref<128x128xbf16, #tpu.memory_space<vmem>>, vector<128x128xbf16>
    %cst = arith.constant dense<0.000000e+00> : vector<200x128xf32>
    %5 = tpu.matmul %3, %4, %cst {dimension_numbers = #tpu.dot_dimension_numbers<[1], [1], [0], [0], [0, 0, 1, 0], [], []>} : vector<200x128xbf16>, vector<128x128xbf16>, vector<200x128xf32> -> vector<200x128xf32>
    %c0_4 = arith.constant 0 : index
    %c0_5 = arith.constant 0 : index
    %6 = vector.load %arg7[%c0_4, %c0_5] : memref<1x128xf32, #tpu.memory_space<vmem>>, vector<1x128xf32>
    %7 = vector.broadcast %6 : vector<1x128xf32> to vector<200x128xf32>
    %8 = arith.addf %5, %7 : vector<200x128xf32>
    %c0_6 = arith.constant 0 : index
    %c0_7 = arith.constant 0 : index
    %9 = vector.load %arg8[%c0_6, %c0_7] : memref<200x128xf32, #tpu.memory_space<vmem>>, vector<200x128xf32>
    tpu.vector_store %arg8[%c0_6, %c0_7], %8 {strides = array<i32>} : memref<200x128xf32, #tpu.memory_space<vmem>>, vector<200x128xf32>,
    return
  }
  func.func @transform_0(%arg0: i32, %arg1: i32) -> i32 {
    %c0_i32 = arith.constant 0 : i32
    %c0_i32_0 = arith.constant 0 : i32
    return %c0_i32 : i32
  }
  func.func @transform_1(%arg0: i32, %arg1: i32) -> (i32, i32) {
    %c0_i32 = arith.constant 0 : i32
    %c0_i32_0 = arith.constant 0 : i32
    return %arg1, %c0_i32 : i32, i32
  }
  func.func @transform_2(%arg0: i32, %arg1: i32) -> (i32, i32) {
    %c0_i32 = arith.constant 0 : i32
    %c0_i32_0 = arith.constant 0 : i32
    return %arg0, %c0_i32 : i32, i32
  }
  func.func @transform_3(%arg0: i32, %arg1: i32) -> (i32, i32) {
    %c0_i32 = arith.constant 0 : i32
    %c0_i32_0 = arith.constant 0 : i32
    return %arg0, %c0_i32 : i32, i32
  }
  func.func @transform_4(%arg0: i32, %arg1: i32) -> (i32, i32) {
    %c0_i32 = arith.constant 0 : i32
    %c0_i32_0 = arith.constant 0 : i32
    return %arg0, %c0_i32 : i32, i32
  }
  func.func @transform_5(%arg0: i32, %arg1: i32) -> (i32, i32) {
    %c0_i32 = arith.constant 0 : i32
    %c0_i32_0 = arith.constant 0 : i32
    return %c0_i32, %arg0 : i32, i32
  }
  func.func @transform_6(%arg0: i32, %arg1: i32) -> (i32, i32) {
    %c0_i32 = arith.constant 0 : i32
    return %arg1, %arg0 : i32, i32
  }
}

</mosaic_0001>

<bundles_post_ra>
// kernel: tpu_custom_call.1
= control target key start
LH: loop header
LB: loop body
LE: loop exit
PB: predicated region body
PF: predicated region fallthrough
CT: control target
= control target key end

     0   :  { %12 = vsyncpa [#allocation5], 0  ;;  %s1358_s0 = inlined_call_operand.<no memory space> [shape: f32[1], index: 0, kind: input, shape index: {}]   ;;  %s1359_s1 = inlined_call_operand.hbm [shape: bf16[200,128], index: 1, kind: input, shape index: {}]   ;;  %s1360_s2 = inlined_call_operand.hbm [shape: f32[128,128], index: 2, kind: input, shape index: {}]   ;;  %s1361_s3 = inlined_call_operand.hbm [shape: s8[128,128], index: 3, kind: input, shape index: {}]   ;;  %s1362_s4 = inlined_call_operand.hbm [shape: f32[128,128], index: 4, kind: input, shape index: {}]   ;;  %s1363_s5 = inlined_call_operand.vmem [shape: f32[1,128], index: 5, kind: input, shape index: {}]   ;;  %s1364_s6 = inlined_call_operand.hbm [shape: f32[200,128], index: 6, kind: output, shape index: {}]  }
   0x1   :  { %13 = vsyncpa [#allocation8], 0 }
   0x2   :  { %14 = vsyncpa [#allocation11], 0 }
   0x3   :  { %15 = vsyncpa [#allocation6], 0  ;;  %s923_s21 = smov [#allocation7]   ;;  %s805_s25 = scalar_lea.hbm %s1360_s2, 2048 }
   0x4   :  { %s35_s22 = sshll.u32 %s923_s21, 4  ;;  %p806_p0 = scmp.ne.s32.totalorder %s1360_s2, %s805_s25  ;;  %s36_s22 = int_to_ptr.vmem [resolvable:$true] %s35_s22 }
   0x5   :  { %p809_p1 = scmp.lt.u32.totalorder %s805_s25, %s1360_s2 }
   0x7   :  { %p811_p2 = pnand %p809_p1, %p806_p0 }
   0x9   :  { %814 = shalt.err (!%p811_p2)
}
   0xa   :  { %s815_s30 = scalar_lea.vmem %s36_s22, 2048  ;;  %p820_p4 = scmp.lt.s32.totalorder %s36_s22, %s36_s22 }
   0xb   :  { %p816_p3 = scmp.ne.s32.totalorder %s36_s22, %s815_s30  ;;  %p821_p5 = scmp.lt.s32.totalorder %s815_s30, %s815_s30 }
   0xd   :  { %p822_p6 = por %p821_p5, %p820_p4 }
   0xf   :  { %p823_p7 = pnand %p822_p6, %p816_p3 }
  0x11   :  { %826 = shalt.err (!%p823_p7)
}
  0x12   :  { %s924_s7 = smov 128   ;;  %s925_s8 = smov 8  }
  0x13   :  { %41 = dma.hbm_to_vmem [thread:$0]  %s1360_s2, 2048, %s36_s22, [#allocation8], %s924_s7, %s924_s7, %s925_s8  }
  0x14   :  { %s926_s11 = smov [#allocation4]   ;;  %s827_s15 = scalar_lea.hbm %s1359_s1, 1600 }
  0x15   :  { %s23_s12 = sshll.u32 %s926_s11, 4  ;;  %p828_p8 = scmp.ne.s32.totalorder %s1359_s1, %s827_s15  ;;  %s24_s12 = int_to_ptr.vmem [resolvable:$true] %s23_s12 }
  0x16   :  { %p831_p9 = scmp.lt.u32.totalorder %s827_s15, %s1359_s1 }
  0x18   :  { %p833_p10 = pnand %p831_p9, %p828_p8 }
  0x1a   :  { %836 = shalt.err (!%p833_p10)
}
  0x1b   :  { %s837_s20 = scalar_lea.vmem %s24_s12, 1600  ;;  %p842_p12 = scmp.lt.s32.totalorder %s24_s12, %s24_s12 }
  0x1c   :  { %p838_p11 = scmp.ne.s32.totalorder %s24_s12, %s837_s20  ;;  %p843_p13 = scmp.lt.s32.totalorder %s837_s20, %s837_s20 }
  0x1e   :  { %p844_p0 = por %p843_p13, %p842_p12 }
  0x20   :  { %p845_p1 = pnand %p844_p0, %p838_p11 }
  0x22   :  { %848 = shalt.err (!%p845_p1)
}
  0x23   :  { %s927_s2 = smov 64   ;;  %s928_s21 = smov 4  }
  0x24   :  { %29 = dma.hbm_to_vmem [thread:$0]  %s1359_s1, 1600, %s24_s12, [#allocation5], %s927_s2, %s927_s2, %s928_s21  }
  0x25   :  { %s929_s24 = smov [#allocation9]   ;;  %s930_s26 = smov [#allocation10]  }
  0x26   :  { %s47_s25 = sshll.u32 %s929_s24, 4  ;;  %s59_s27 = sshll.u32 %s930_s26, 4  ;;  %s48_s25 = int_to_ptr.vmem [resolvable:$true] %s47_s25  ;;  %s997_s27 = int_to_ptr.vmem [resolvable:$true] %s59_s27 }
  0x27   :  { %s849_s30 = scalar_lea.hbm %s1361_s3, 512 }
  0x28   :  { %p850_p2 = scmp.ne.s32.totalorder %s1361_s3, %s849_s30  ;;  %p853_p3 = scmp.lt.u32.totalorder %s849_s30, %s1361_s3 }
  0x2a   :  { %p855_p4 = pnand %p853_p3, %p850_p2 }
  0x2c   :  { %858 = shalt.err (!%p855_p4)
}
  0x2d   :  { %s859_s1 = scalar_lea.vmem %s48_s25, 512  ;;  %p864_p6 = scmp.lt.s32.totalorder %s48_s25, %s48_s25 }
  0x2e   :  { %p860_p5 = scmp.ne.s32.totalorder %s48_s25, %s859_s1  ;;  %p865_p7 = scmp.lt.s32.totalorder %s859_s1, %s859_s1 }
  0x30   :  { %p866_p8 = por %p865_p7, %p864_p6 }
  0x32   :  { %p867_p9 = pnand %p866_p8, %p860_p5 }
  0x34   :  { %870 = shalt.err (!%p867_p9)
}
  0x35   :  { %53 = dma.hbm_to_vmem [thread:$0]  %s1361_s3, 512, %s48_s25, [#allocation8], %s924_s7, %s924_s7, %s925_s8  }
  0x36   :  { %s871_s17 = scalar_lea.hbm %s1362_s4, 2048 }
  0x37   :  { %p872_p10 = scmp.ne.s32.totalorder %s1362_s4, %s871_s17  ;;  %p875_p11 = scmp.lt.u32.totalorder %s871_s17, %s1362_s4 }
  0x39   :  { %p877_p12 = pnand %p875_p11, %p872_p10 }
  0x3b   :  { %880 = shalt.err (!%p877_p12)
}
  0x3c   :  { %s881_s21 = scalar_lea.vmem %s997_s27, 2048  ;;  %p886_p0 = scmp.lt.s32.totalorder %s997_s27, %s997_s27 }
  0x3d   :  { %p882_p13 = scmp.ne.s32.totalorder %s997_s27, %s881_s21  ;;  %p887_p1 = scmp.lt.s32.totalorder %s881_s21, %s881_s21 }
  0x3f   :  { %p888_p2 = por %p887_p1, %p886_p0 }
  0x41   :  { %p889_p3 = pnand %p888_p2, %p882_p13 }
  0x43   :  { %892 = shalt.err (!%p889_p3)
}
  0x44   :  { %65 = dma.hbm_to_vmem [thread:$0]  %s1362_s4, 2048, %s997_s27, [#allocation11], %s924_s7, %s924_s7, %s925_s8  }
  0x45   :  { %915 = dma.done.wait [#allocation5], 1600  }
  0x46   :  { %916 = vsyncadd [#allocation5], 4294965696 }
  0x47   :  { %917 = dma.done.wait [#allocation8], 2560  }
  0x48   :  { %918 = vsyncadd [#allocation8], 4294964736 }
  0x49   :  { %919 = dma.done.wait [#allocation11], 2048  }
  0x4a   :  { %920 = vsyncadd [#allocation11], 4294965248  ;;  %v931_v0 = vmov 0.0   ;;  %vm932_vm0 = vmmov 0   ;;  %v1040_v1 = vld [vmem:[#allocation7] sm:$0xff]  ;;  %v1042_v2 = vld [vmem:[#allocation7 + $0x8] sm:$0xff]  ;;  %v1054_v12 = vstv %s1358_s0 }
  0x4b   :  { %696 = vmatprep.subr.bf16.mxu0 %v931_v0  ;;  %764 = vmatprep.subr.bf16.mxu1 %v931_v0  ;;  %v103_v3 = vld [vmem:[#allocation9] sm:$0xff]  ;;  %v933_v4 = vmov 0   ;;  %v259_v6 = vand.u32 2147483647, %v1040_v1  ;;  %v1046_v7 = vld [vmem:[#allocation7 + $0x10] sm:$0xff]  ;;  %v1048_v8 = vld [vmem:[#allocation7 + $0x18] sm:$0xff] }
  0x4c   :  { %712 = vmatprep.mubr.msk.bf16.mxu0 %vm932_vm0, %v931_v0  ;;  %740 = vmatprep.mubr.msk.bf16.mxu1 %vm932_vm0, %v931_v0  ;;  %vm107_vm1 = vnez %v103_v3  ;;  %v260_v11 = vand.u32 2147483647, %v1042_v2  ;;  %v261_v15 = vand.u32 2147483647, %v1046_v7  ;;  %v104_v16 = vld [vmem:[#allocation9 + $0x8] sm:$0xff]  ;;  %v111_v35 = vld [vmem:[#allocation10] sm:$0xff] }
  0x4d   :  { %v127_v5 = vsel %vm107_vm1, 16843009, %v933_v4  ;;  %v262_v19 = vand.u32 2147483647, %v1048_v8  ;;  %vm108_vm2 = vnez %v104_v16  ;;  %vm1059_vm3 = vcmp.lt.f32.partialorder %v259_v6, %v1054_v12  ;;  %v112_v36 = vld [vmem:[#allocation10 + $0x8] sm:$0xff]  ;;  %v113_v41 = vld [vmem:[#allocation10 + $0x10] sm:$0xff] }
  0x4e   :  { %v131_v9 = vunpack.c.0.s8 %v127_v5  ;;  %v132_v10 = vunpack.c.1.s8 %v127_v5  ;;  %v133_v13 = vunpack.c.2.s8 %v127_v5  ;;  %v134_v14 = vunpack.c.3.s8 %v127_v5  ;;  %vm636_vm12 = vmneg %vm1059_vm3  ;;  %v1087_v44 = vld [vmem:[#allocation7 + $0x28] sm:$0xff]  ;;  %v114_v47 = vld [vmem:[#allocation10 + $0x18] sm:$0xff] }
  0x4f   :  { %vm1064_vm4 = vcmp.lt.f32.partialorder %v260_v11, %v1054_v12  ;;  %v128_v26 = vsel %vm108_vm2, 16843009, %v933_v4  ;;  %vm1070_vm7 = vcmp.lt.f32.partialorder %v261_v15, %v1054_v12  ;;  %vm1075_vm8 = vcmp.lt.f32.partialorder %v262_v19, %v1054_v12  ;;  %v1105_v54 = vld [vmem:[#allocation7 + $0x20] sm:$0xff]  ;;  %v105_v55 = vld [vmem:[#allocation9 + $0x10] sm:$0xff]  ;;  %v94_v25 = vld [vmem:[#allocation7 + $0x38] sm:$0xff] }
  0x50   :  { %v147_v17 = vpack.c.b16 %v131_v9, %v131_v9  ;;  %v149_v18 = vpack.c.b16 %v132_v10, %v132_v10  ;;  %v151_v21 = vpack.c.b16 %v133_v13, %v133_v13  ;;  %v153_v22 = vpack.c.b16 %v134_v14, %v134_v14  ;;  %vm635_vm9 = vmneg %vm1064_vm4  ;;  %v115_v10 = vld [vmem:[#allocation10 + $0x20] sm:$0xff]  ;;  %v116_v14 = vld [vmem:[#allocation10 + $0x28] sm:$0xff] }
  0x51   :  { %v135_v29 = vunpack.c.0.s8 %v128_v26  ;;  %v136_v30 = vunpack.c.1.s8 %v128_v26  ;;  %v137_v48 = vunpack.c.2.s8 %v128_v26  ;;  %v138_v49 = vunpack.c.3.s8 %v128_v26  ;;  %vm637_vm15 = vmpackc.low %vm635_vm9, %vm636_vm12  ;;  %v93_v20 = vld [vmem:[#allocation7 + $0x30] sm:$0xff]  ;;  %v96_v52 = vld [vmem:[#allocation7 + $0x48] sm:$0xff] }
  0x52   :  { %v148_v23 = vpack.c.b8 %v147_v17, %v147_v17  ;;  %v150_v24 = vpack.c.b8 %v149_v18, %v149_v18  ;;  %v152_v27 = vpack.c.b8 %v151_v21, %v151_v21  ;;  %v154_v28 = vpack.c.b8 %v153_v22, %v153_v22  ;;  %vm641_vm9 = vmneg %vm1070_vm7 }
  0x53   :  { %v155_v45 = vpack.c.b16 %v135_v29, %v135_v29  ;;  %v157_v46 = vpack.c.b16 %v136_v30, %v136_v30  ;;  %v264_v59 = vand.u32 2147483647, %v1087_v44  ;;  %v159_v62 = vpack.c.b16 %v137_v48, %v137_v48 }
  0x54   :  { %vm179_vm5 = vnez %v148_v23  ;;  %vm180_vm6 = vnez %v150_v24  ;;  %vm181_vm10 = vnez %v152_v27  ;;  %vm182_vm11 = vnez %v154_v28 }
  0x55   :  { %v195_v33 = vsel %vm179_vm5, 16843009, %v933_v4  ;;  %v196_v34 = vsel %vm180_vm6, 16843009, %v933_v4  ;;  %v197_v39 = vsel %vm181_vm10, 16843009, %v933_v4  ;;  %v156_v58 = vpack.c.b8 %v155_v45, %v155_v45  ;;  %vm640_vm5 = vmneg %vm1075_vm8 }
  0x56   :  { %v211_v37 = vunpack.c.0.s8 %v195_v33  ;;  %v212_v38 = vunpack.c.0.s8 %v196_v34  ;;  %v198_v40 = vsel %vm182_vm11, 16843009, %v933_v4  ;;  %v213_v42 = vunpack.c.0.s8 %v197_v39  ;;  %v106_v33 = vld [vmem:[#allocation9 + $0x18] sm:$0xff] }
  0x57   :  { %v214_v43 = vunpack.c.0.s8 %v198_v40  ;;  %v158_v61 = vpack.c.b8 %v157_v46, %v157_v46  ;;  %v161_v63 = vpack.c.b16 %v138_v49, %v138_v49  ;;  %vm183_vm3 = vnez %v156_v58  ;;  %v124_v46 = vld [vmem:[#allocation10 + $0x68] sm:$0xff] }
  0x58   :  { %vm227_vm13 = vcmp.ne.s32.totalorder %v211_v37, 0  ;;  %vm228_vm14 = vcmp.ne.s32.totalorder %v212_v38, 0  ;;  %vm1097_vm1 = vcmp.ne.s32.totalorder %v213_v42, 0  ;;  %vm109_vm4 = vnez %v105_v55  ;;  %v117_v37 = vld [vmem:[#allocation10 + $0x30] sm:$0xff] }
  0x59   :  { %v243_v50 = vsel %vm227_vm13, %v1040_v1, %v111_v35  ;;  %v244_v51 = vsel %vm228_vm14, %v1042_v2, %v112_v36  ;;  %vm1101_vm2 = vcmp.ne.s32.totalorder %v214_v43, 0  ;;  %v245_v57 = vsel %vm1097_vm1, %v1046_v7, %v113_v41  ;;  %vm642_vm14 = vmpackc.low %vm640_vm5, %vm641_vm9  ;;  %v118_v41 = vld [vmem:[#allocation10 + $0x38] sm:$0xff] }
  0x5a   :  { %v638_v56 = vpack.c.bf16 %v244_v51, %v243_v50  ;;  %v246_v60 = vsel %vm1101_vm2, %v1048_v8, %v114_v47  ;;  %v263_v1 = vand.u32 2147483647, %v1105_v54  ;;  %vm184_vm6 = vnez %v158_v61  ;;  %v95_v51 = vld [vmem:[#allocation7 + $0x40] sm:$0xff] }
  0x5b   :  { %v199_v2 = vsel %vm183_vm3, 16843009, %v933_v4  ;;  %v160_v3 = vpack.c.b8 %v159_v62, %v159_v62  ;;  %v162_v5 = vpack.c.b8 %v161_v63, %v161_v63  ;;  %v643_v6 = vpack.c.bf16 %v246_v60, %v245_v57  ;;  %v119_v63 = vld [vmem:[#allocation10 + $0x40] sm:$0xff]  ;;  %v126_v62 = vld [vmem:[#allocation10 + $0x78] sm:$0xff] }
  0x5c   :  { %697 = vmatpush3.bf16.xpose.msk.msra.mxu0 %vm637_vm15, %v638_v56  ;;  %772 = vmatpush3.bf16.xpose.msk.msra.mxu1 %vm637_vm15, %v638_v56  ;;  %v200_v7 = vsel %vm184_vm6, 16843009, %v933_v4  ;;  %v215_v8 = vunpack.c.0.s8 %v199_v2  ;;  %vm1124_vm10 = vcmp.lt.f32.partialorder %v264_v59, %v1054_v12  ;;  %v129_v13 = vsel %vm109_vm4, 16843009, %v933_v4 }
  0x5d   :  { %698 = vmatprep.subr.bf16.mxu0 %v931_v0  ;;  %765 = vmatprep.subr.bf16.mxu1 %v931_v0  ;;  %v216_v11 = vunpack.c.0.s8 %v200_v7  ;;  %vm185_vm11 = vnez %v160_v3  ;;  %vm186_vm12 = vnez %v162_v5  ;;  %v139_v18 = vunpack.c.0.s8 %v129_v13  ;;  %vm645_vm7 = vmneg %vm1124_vm10  ;;  %v796_v7 = vld [vmem:[#allocation4 + $0x10] sm:$0xff]  }
  0x5e   :  { %vm1130_vm13 = vcmp.ne.s32.totalorder %v215_v8, 0  ;;  %v201_v16 = vsel %vm185_vm11, 16843009, %v933_v4  ;;  %v202_v17 = vsel %vm186_vm12, 16843009, %v933_v4  ;;  %v140_v21 = vunpack.c.1.s8 %v129_v13 }
  0x5f   :  { %vm1142_vm15 = vcmp.ne.s32.totalorder %v216_v11, 0  ;;  %v163_v22 = vpack.c.b16 %v139_v18, %v139_v18  ;;  %v247_v23 = vsel %vm1130_vm13, %v1105_v54, %v115_v10  ;;  %vm1150_vm1 = vcmp.lt.f32.partialorder %v263_v1, %v1054_v12  ;;  %v120_v1 = vld [vmem:[#allocation10 + $0x48] sm:$0xff]  ;;  %v97_v10 = vld [vmem:[#allocation7 + $0x50] sm:$0xff] }
  0x60   :  { %v217_v26 = vunpack.c.0.s8 %v201_v16  ;;  %v248_v27 = vsel %vm1142_vm15, %v1087_v44, %v116_v14  ;;  %v218_v28 = vunpack.c.0.s8 %v202_v17  ;;  %v141_v30 = vunpack.c.2.s8 %v129_v13  ;;  %vm646_vm8 = vmneg %vm1150_vm1  ;;  %v98_v14 = vld [vmem:[#allocation7 + $0x58] sm:$0xff] }
  0x61   :  { %v164_v29 = vpack.c.b8 %v163_v22, %v163_v22  ;;  %v165_v31 = vpack.c.b16 %v140_v21, %v140_v21  ;;  %v142_v32 = vunpack.c.3.s8 %v129_v13  ;;  %v265_v34 = vand.u32 2147483647, %v93_v20  ;;  %vm647_vm6 = vmpackc.low %vm645_vm7, %vm646_vm8 }
  0x62   :  { %v266_v35 = vand.u32 2147483647, %v94_v25  ;;  %v648_v36 = vpack.c.bf16 %v248_v27, %v247_v23  ;;  %vm1163_vm3 = vcmp.ne.s32.totalorder %v217_v26, 0  ;;  %v167_v40 = vpack.c.b16 %v141_v30, %v141_v30  ;;  %v121_v26 = vld [vmem:[#allocation10 + $0x50] sm:$0xff]  ;;  %v122_v27 = vld [vmem:[#allocation10 + $0x58] sm:$0xff] }
  0x63   :  { %vm187_vm2 = vnez %v164_v29  ;;  %v166_v39 = vpack.c.b8 %v165_v31, %v165_v31  ;;  %vm1167_vm4 = vcmp.ne.s32.totalorder %v218_v28, 0  ;;  %v169_v44 = vpack.c.b16 %v142_v32, %v142_v32  ;;  %v99_v32 = vld [vmem:[#allocation7 + $0x60] sm:$0xff] }
  0x64   :  { %699 = vmatpush3.bf16.xpose.msk.msra.mxu0 %vm642_vm14, %v643_v6  ;;  %773 = vmatpush3.bf16.xpose.msk.msra.mxu1 %vm642_vm14, %v643_v6  ;;  %v203_v43 = vsel %vm187_vm2, 16843009, %v933_v4  ;;  %vm110_vm5 = vnez %v106_v33  ;;  %vm1177_vm11 = vcmp.lt.f32.partialorder %v265_v34, %v1054_v12  ;;  %vm1182_vm12 = vcmp.lt.f32.partialorder %v266_v35, %v1054_v12  ;;  %v100_v35 = vld [vmem:[#allocation7 + $0x68] sm:$0xff]  ;;  %v795_v6 = vld [vmem:[#allocation4 + $0x40] sm:$0xff]  }
  0x65   :  { %700 = vmatprep.subr.bf16.mxu0 %v931_v0  ;;  %766 = vmatprep.subr.bf16.mxu1 %v931_v0  ;;  %vm188_vm9 = vnez %v166_v39  ;;  %v130_v45 = vsel %vm110_vm5, 16843009, %v933_v4  ;;  %v249_v49 = vsel %vm1163_vm3, %v93_v20, %v117_v37  ;;  %v250_v50 = vsel %vm1167_vm4, %v94_v25, %v118_v41  ;;  %vm650_vm10 = vmneg %vm1182_vm12 }
  0x66   :  { %v204_v48 = vsel %vm188_vm9, 16843009, %v933_v4  ;;  %v219_v53 = vunpack.c.0.s8 %v203_v43  ;;  %v168_v54 = vpack.c.b8 %v167_v40, %v167_v40  ;;  %v170_v56 = vpack.c.b8 %v169_v44, %v169_v44  ;;  %vm651_vm13 = vmneg %vm1177_vm11 }
  0x67   :  { %v220_v55 = vunpack.c.0.s8 %v204_v48  ;;  %v143_v57 = vunpack.c.0.s8 %v130_v45  ;;  %v144_v58 = vunpack.c.1.s8 %v130_v45  ;;  %v267_v59 = vand.u32 2147483647, %v95_v51  ;;  %vm652_vm8 = vmpackc.low %vm650_vm10, %vm651_vm13 }
  0x68   :  { %v268_v60 = vand.u32 2147483647, %v96_v52  ;;  %v653_v61 = vpack.c.bf16 %v250_v50, %v249_v49  ;;  %vm1197_vm14 = vcmp.ne.s32.totalorder %v219_v53, 0  ;;  %vm189_vm15 = vnez %v168_v54  ;;  %v101_v54 = vld [vmem:[#allocation7 + $0x70] sm:$0xff] }
  0x69   :  { %vm1201_vm1 = vcmp.ne.s32.totalorder %v220_v55, 0  ;;  %vm190_vm7 = vnez %v170_v56  ;;  %v171_v3 = vpack.c.b16 %v143_v57, %v143_v57  ;;  %v173_v5 = vpack.c.b16 %v144_v58, %v144_v58 }
  0x6a   :  { %vm1206_vm2 = vcmp.lt.f32.partialorder %v267_v59, %v1054_v12  ;;  %vm1211_vm3 = vcmp.lt.f32.partialorder %v268_v60, %v1054_v12  ;;  %v251_v8 = vsel %vm1197_vm14, %v95_v51, %v119_v63  ;;  %v252_v9 = vsel %vm1201_vm1, %v96_v52, %v120_v1  ;;  %v102_v51 = vld [vmem:[#allocation7 + $0x78] sm:$0xff] }
  0x6b   :  { %v205_v11 = vsel %vm189_vm15, 16843009, %v933_v4  ;;  %v206_v13 = vsel %vm190_vm7, 16843009, %v933_v4  ;;  %v172_v15 = vpack.c.b8 %v171_v3, %v171_v3  ;;  %v174_v16 = vpack.c.b8 %v173_v5, %v173_v5  ;;  %vm656_vm4 = vmneg %vm1206_vm2  ;;  %v792_v3 = vld [vmem:[#allocation4] sm:$0xff]   ;;  %v793_v5 = vld [vmem:[#allocation4 + $0x38] sm:$0xff]  }
  0x6c   :  { %701 = vmatpush3.bf16.xpose.msk.msra.mxu0 %vm647_vm6, %v648_v36  ;;  %774 = vmatpush3.bf16.xpose.msk.msra.mxu1 %vm647_vm6, %v648_v36  ;;  %v145_v17 = vunpack.c.2.s8 %v130_v45  ;;  %v146_v18 = vunpack.c.3.s8 %v130_v45  ;;  %vm655_vm5 = vmneg %vm1211_vm3  ;;  %v221_v19 = vunpack.c.0.s8 %v205_v11  ;;  %v222_v20 = vunpack.c.0.s8 %v206_v13  ;;  %v123_v45 = vld [vmem:[#allocation10 + $0x60] sm:$0xff]  ;;  %v801_v13 = vld [vmem:[#allocation4 + $0x58] sm:$0xff]  }
  0x6d   :  { %702 = vmatprep.subr.bf16.mxu0 %v931_v0  ;;  %767 = vmatprep.subr.bf16.mxu1 %v931_v0  ;;  %v269_v21 = vand.u32 2147483647, %v97_v10  ;;  %v658_v22 = vpack.c.bf16 %v252_v9, %v251_v8  ;;  %v270_v23 = vand.u32 2147483647, %v98_v14  ;;  %vm191_vm6 = vnez %v172_v15  ;;  %vm657_vm11 = vmpackc.low %vm655_vm5, %vm656_vm4  ;;  %v797_v8 = vld [vmem:[#allocation4 + $0x48] sm:$0xff]   ;;  %v798_v9 = vld [vmem:[#allocation4 + $0x18] sm:$0xff]  }
  0x6e   :  { %vm192_vm9 = vnez %v174_v16  ;;  %v175_v24 = vpack.c.b16 %v145_v17, %v145_v17  ;;  %v177_v25 = vpack.c.b16 %v146_v18, %v146_v18  ;;  %vm1227_vm12 = vcmp.ne.s32.totalorder %v221_v19, 0  ;;  %v800_v11 = vld [vmem:[#allocation4 + $0x20] sm:$0xff]   ;;  %v804_v16 = vld [vmem:[#allocation4 + $0x30] sm:$0xff]  }
  0x6f   :  { %vm1231_vm10 = vcmp.ne.s32.totalorder %v222_v20, 0  ;;  %vm1236_vm13 = vcmp.lt.f32.partialorder %v269_v21, %v1054_v12  ;;  %vm1241_vm14 = vcmp.lt.f32.partialorder %v270_v23, %v1054_v12  ;;  %v207_v33 = vsel %vm191_vm6, 16843009, %v933_v4  ;;  %v803_v15 = vld [vmem:[#allocation4 + $0x60] ss:$0 sps:$4 sm:$0xff]  }
  0x70   :  { %v208_v34 = vsel %vm192_vm9, 16843009, %v933_v4  ;;  %v176_v36 = vpack.c.b8 %v175_v24, %v175_v24  ;;  %v178_v37 = vpack.c.b8 %v177_v25, %v177_v25  ;;  %v253_v38 = vsel %vm1227_vm12, %v97_v10, %v121_v26  ;;  %vm661_vm15 = vmneg %vm1236_vm13  ;;  %v799_v10 = vld [vmem:[#allocation4 + $0x50] sm:$0xff]   ;;  %v1316_v17 = vld [vmem:[%s1363_s5] ss:$0 sm:$0xff]  ;;  %s934_s5 = smov [#allocation12]  }
  0x71   :  { %v254_v39 = vsel %vm1231_vm10, %v98_v14, %v122_v27  ;;  %vm660_vm1 = vmneg %vm1241_vm14  ;;  %v223_v40 = vunpack.c.0.s8 %v207_v33  ;;  %v224_v41 = vunpack.c.0.s8 %v208_v34  ;;  %v271_v42 = vand.u32 2147483647, %v99_v32  ;;  %v802_v14 = vld [vmem:[#allocation4 + $0x28] sm:$0xff]   ;;  %s607_s25 = sshll.u32 %s934_s5, 4  ;;  %s608_s25 = int_to_ptr.vmem [resolvable:$true] %s607_s25 }
  0x72   :  { %v272_v43 = vand.u32 2147483647, %v100_v35  ;;  %v663_v44 = vpack.c.bf16 %v254_v39, %v253_v38  ;;  %vm193_vm7 = vnez %v176_v36  ;;  %vm662_vm2 = vmpackc.low %vm660_vm1, %vm661_vm15  ;;  %v274_v58 = vand.u32 2147483647, %v102_v51  ;;  %s893_s26 = scalar_lea.vmem %s608_s25, 3200  ;;  %p898_p5 = scmp.lt.s32.totalorder %s608_s25, %s608_s25 }
  0x73   :  { %vm1257_vm3 = vcmp.ne.s32.totalorder %v223_v40, 0  ;;  %vm1261_vm4 = vcmp.ne.s32.totalorder %v224_v41, 0  ;;  %vm1266_vm5 = vcmp.lt.f32.partialorder %v271_v42, %v1054_v12  ;;  %v209_v52 = vsel %vm193_vm7, 16843009, %v933_v4  ;;  %p894_p4 = scmp.ne.s32.totalorder %s608_s25, %s893_s26  ;;  %p899_p6 = scmp.lt.s32.totalorder %s893_s26, %s893_s26 }
  0x74   :  { %703 = vmatpush3.bf16.xpose.msk.msra.mxu0 %vm652_vm8, %v653_v61  ;;  %775 = vmatpush3.bf16.xpose.msk.msra.mxu1 %vm652_vm8, %v653_v61  ;;  %vm194_vm8 = vnez %v178_v37  ;;  %vm1271_vm6 = vcmp.lt.f32.partialorder %v272_v43, %v1054_v12  ;;  %v255_v55 = vsel %vm1257_vm3, %v99_v32, %v123_v45  ;;  %v256_v56 = vsel %vm1261_vm4, %v100_v35, %v124_v46  ;;  %vm666_vm9 = vmneg %vm1266_vm5  ;;  %v125_v61 = vld [vmem:[#allocation10 + $0x70] sm:$0xff] }
  0x75   :  { %704 = vmatprep.subr.bf16.mxu0 %v931_v0  ;;  %768 = vmatprep.subr.bf16.mxu1 %v931_v0  ;;  %v210_v53 = vsel %vm194_vm8, 16843009, %v933_v4  ;;  %v225_v4 = vunpack.c.0.s8 %v209_v52  ;;  %v273_v59 = vand.u32 2147483647, %v101_v54  ;;  %v668_v60 = vpack.c.bf16 %v256_v56, %v255_v55  ;;  %p900_p7 = por %p899_p6, %p898_p5 }
  0x76   :  { %v226_v57 = vunpack.c.0.s8 %v210_v53  ;;  %vm292_vm14 = vcmp.lt.f32.partialorder %v274_v58, %v1054_v12 }
  0x77   :  { %vm241_vm10 = vcmp.ne.s32.totalorder %v225_v4, 0  ;;  %vm291_vm15 = vcmp.lt.f32.partialorder %v273_v59, %v1054_v12  ;;  %vm670_vm1 = vmneg %vm292_vm14  ;;  %v794_v12 = vld [vmem:[#allocation4 + $0x8] sm:$0xff]   ;;  %p901_p8 = pnand %p900_p7, %p894_p4 }
  0x78   :  { %vm242_vm13 = vcmp.ne.s32.totalorder %v226_v57, 0  ;;  %v257_v63 = vsel %vm241_vm10, %v101_v54, %v125_v61  ;;  %vm671_vm7 = vmneg %vm291_vm15 }
  0x79   :  { %v258_v1 = vsel %vm242_vm13, %v102_v51, %v126_v62  ;;  %vm672_vm8 = vmpackc.low %vm670_vm1, %vm671_vm7 }
  0x7a   :  { %v673_v2 = vpack.c.bf16 %v258_v1, %v257_v63 }
  0x7c   :  { %705 = vmatpush3.bf16.xpose.msk.msra.mxu0 %vm657_vm11, %v658_v22  ;;  %776 = vmatpush3.bf16.xpose.msk.msra.mxu1 %vm657_vm11, %v658_v22  ;;  %vm665_vm11 = vmneg %vm1271_vm6 }
  0x7d   :  { %706 = vmatprep.subr.bf16.mxu0 %v931_v0  ;;  %769 = vmatprep.subr.bf16.mxu1 %v931_v0  ;;  %vm667_vm12 = vmpackc.low %vm665_vm11, %vm666_vm9 }
  0x84   :  { %707 = vmatpush3.bf16.xpose.msk.msra.mxu0 %vm662_vm2, %v663_v44  ;;  %777 = vmatpush3.bf16.xpose.msk.msra.mxu1 %vm662_vm2, %v663_v44 }
  0x85   :  { %708 = vmatprep.subr.bf16.mxu0 %v931_v0  ;;  %770 = vmatprep.subr.bf16.mxu1 %v931_v0 }
  0x8c   :  { %709 = vmatpush3.bf16.xpose.msk.msra.mxu0 %vm667_vm12, %v668_v60  ;;  %778 = vmatpush3.bf16.xpose.msk.msra.mxu1 %vm667_vm12, %v668_v60 }
  0x8d   :  { %710 = vmatprep.subr.bf16.mxu0 %v931_v0  ;;  %771 = vmatprep.subr.bf16.mxu1 %v931_v0 }
  0x94   :  { %711 = vmatpush3.bf16.xpose.msk.msra.mxu0 %vm672_vm8, %v673_v2  ;;  %779 = vmatpush3.bf16.xpose.msk.msra.mxu1 %vm672_vm8, %v673_v2 }
  0x9b   :  { %713 = vmatmul.mubr.bf16.vlgmr.msra.gmra.mrb[0].mxu0 %v792_v3  ;;  %741 = vmatmul.mubr.bf16.vlgmr.msra.gmra.mrb[0].mxu1 %v793_v5 }
  0x9c   :  { %716 = vmatprep.mubr.msk.bf16.mxu0 %vm932_vm0, %v931_v0  ;;  %744 = vmatprep.mubr.msk.bf16.mxu1 %vm932_vm0, %v931_v0 }
  0xa3   :  { %717 = vmatmul.mubr.bf16.gmra.mrb[4].mxu0 %v794_v12  ;;  %745 = vmatmul.mubr.bf16.gmra.mrb[4].mxu1 %v795_v6 }
  0xa4   :  { %720 = vmatprep.mubr.msk.bf16.mxu0 %vm932_vm0, %v931_v0  ;;  %748 = vmatprep.mubr.msk.bf16.mxu1 %vm932_vm0, %v931_v0 }
  0xab   :  { %721 = vmatmul.mubr.bf16.gmra.mrb[8].mxu0 %v796_v7  ;;  %749 = vmatmul.mubr.bf16.gmra.mrb[8].mxu1 %v797_v8 }
  0xac   :  { %724 = vmatprep.mubr.msk.bf16.mxu0 %vm932_vm0, %v931_v0  ;;  %752 = vmatprep.mubr.msk.bf16.mxu1 %vm932_vm0, %v931_v0 }
  0xb3   :  { %725 = vmatmul.mubr.bf16.gmra.mrb[12].mxu0 %v798_v9  ;;  %753 = vmatmul.mubr.bf16.gmra.mrb[12].mxu1 %v799_v10 }
  0xb4   :  { %728 = vmatprep.mubr.msk.bf16.mxu0 %vm932_vm0, %v931_v0  ;;  %756 = vmatprep.mubr.msk.bf16.mxu1 %vm932_vm0, %v931_v0 }
  0xbb   :  { %729 = vmatmul.mubr.bf16.gmra.mrb[16].mxu0 %v800_v11  ;;  %757 = vmatmul.mubr.bf16.gmra.mrb[16].mxu1 %v801_v13 }
  0xbc   :  { %732 = vmatprep.mubr.msk.bf16.mxu0 %vm932_vm0, %v931_v0  ;;  %760 = vmatprep.mubr.msk.bf16.mxu1 %vm932_vm0, %v931_v0 }
  0xc3   :  { %733 = vmatmul.mubr.bf16.gmra.mrb[20].mxu0 %v802_v14  ;;  %761 = vmatmul.mubr.bf16.gmra.mrb[20].mxu1 %v803_v15 }
  0xc4   :  { %736 = vmatprep.mubr.msk.bf16.mxu0 %vm932_vm0, %v931_v0 }
  0xcb   :  { %737 = vmatmul.mubr.bf16.gmra.mrb[24].mxu0 %v804_v16 }
 0x16e   :  { %v475_v18 = vpop.f32.mrb[0].mxu0  ;;  %v531_v19 = vpop.f32.mrb[0].mxu1 }
 0x16f   :  { %v476_v20 = vadd.f32 %v1316_v17, %v475_v18  ;;  %v714_v21 = vpop.f32.mrb[1].mxu0  ;;  %v532_v22 = vadd.f32 %v1316_v17, %v531_v19  ;;  %v742_v23 = vpop.f32.mrb[1].mxu1 }
 0x170   :  { %v478_v24 = vpop.f32.mrb[2].mxu0  ;;  %v534_v25 = vpop.f32.mrb[2].mxu1 }
 0x171   :  { %577 = vst [vmem:[#allocation12] sm:$0xff] %v476_v20  ;;  %v479_v0 = vadd.f32 %v1316_v17, %v478_v24  ;;  %v715_v26 = vpop.f32.mrb[3].mxu0  ;;  %591 = vst [vmem:[#allocation12 + $0x70] sm:$0xff] %v532_v22  ;;  %v535_v27 = vadd.f32 %v1316_v17, %v534_v25  ;;  %v743_v28 = vpop.f32.mrb[3].mxu1 }
 0x173   :  { %578 = vst [vmem:[#allocation12 + $0x8] sm:$0xff] %v479_v0  ;;  %592 = vst [vmem:[#allocation12 + $0x78] sm:$0xff] %v535_v27 }
 0x176   :  { %v483_v29 = vpop.f32.mrb[4].mxu0  ;;  %v539_v30 = vpop.f32.mrb[4].mxu1 }
 0x177   :  { %v484_v31 = vadd.f32 %v1316_v17, %v483_v29  ;;  %v718_v32 = vpop.f32.mrb[5].mxu0  ;;  %v540_v33 = vadd.f32 %v1316_v17, %v539_v30  ;;  %v746_v34 = vpop.f32.mrb[5].mxu1 }
 0x178   :  { %v486_v35 = vpop.f32.mrb[6].mxu0  ;;  %v542_v36 = vpop.f32.mrb[6].mxu1 }
 0x179   :  { %579 = vst [vmem:[#allocation12 + $0x10] sm:$0xff] %v484_v31  ;;  %v487_v37 = vadd.f32 %v1316_v17, %v486_v35  ;;  %v719_v38 = vpop.f32.mrb[7].mxu0  ;;  %593 = vst [vmem:[#allocation12 + $0x80] sm:$0xff] %v540_v33  ;;  %v543_v39 = vadd.f32 %v1316_v17, %v542_v36  ;;  %v747_v40 = vpop.f32.mrb[7].mxu1 }
 0x17b   :  { %580 = vst [vmem:[#allocation12 + $0x18] sm:$0xff] %v487_v37  ;;  %594 = vst [vmem:[#allocation12 + $0x88] sm:$0xff] %v543_v39 }
 0x17e   :  { %v491_v41 = vpop.f32.mrb[8].mxu0  ;;  %v547_v42 = vpop.f32.mrb[8].mxu1 }
 0x17f   :  { %v492_v43 = vadd.f32 %v1316_v17, %v491_v41  ;;  %v722_v44 = vpop.f32.mrb[9].mxu0  ;;  %v548_v45 = vadd.f32 %v1316_v17, %v547_v42  ;;  %v750_v46 = vpop.f32.mrb[9].mxu1 }
 0x180   :  { %v494_v47 = vpop.f32.mrb[10].mxu0  ;;  %v550_v48 = vpop.f32.mrb[10].mxu1 }
 0x181   :  { %581 = vst [vmem:[#allocation12 + $0x20] sm:$0xff] %v492_v43  ;;  %v495_v49 = vadd.f32 %v1316_v17, %v494_v47  ;;  %v723_v50 = vpop.f32.mrb[11].mxu0  ;;  %595 = vst [vmem:[#allocation12 + $0x90] sm:$0xff] %v548_v45  ;;  %v551_v51 = vadd.f32 %v1316_v17, %v550_v48  ;;  %v751_v52 = vpop.f32.mrb[11].mxu1 }
 0x183   :  { %582 = vst [vmem:[#allocation12 + $0x28] sm:$0xff] %v495_v49  ;;  %596 = vst [vmem:[#allocation12 + $0x98] sm:$0xff] %v551_v51 }
 0x186   :  { %v499_v53 = vpop.f32.mrb[12].mxu0  ;;  %v555_v54 = vpop.f32.mrb[12].mxu1 }
 0x187   :  { %v500_v55 = vadd.f32 %v1316_v17, %v499_v53  ;;  %v726_v56 = vpop.f32.mrb[13].mxu0  ;;  %v556_v4 = vadd.f32 %v1316_v17, %v555_v54  ;;  %v754_v57 = vpop.f32.mrb[13].mxu1 }
 0x188   :  { %v502_v58 = vpop.f32.mrb[14].mxu0  ;;  %v558_v59 = vpop.f32.mrb[14].mxu1 }
 0x189   :  { %583 = vst [vmem:[#allocation12 + $0x30] sm:$0xff] %v500_v55  ;;  %v503_v60 = vadd.f32 %v1316_v17, %v502_v58  ;;  %v727_v61 = vpop.f32.mrb[15].mxu0  ;;  %597 = vst [vmem:[#allocation12 + $0xa0] sm:$0xff] %v556_v4  ;;  %v559_v62 = vadd.f32 %v1316_v17, %v558_v59  ;;  %v755_v63 = vpop.f32.mrb[15].mxu1 }
 0x18b   :  { %584 = vst [vmem:[#allocation12 + $0x38] sm:$0xff] %v503_v60  ;;  %598 = vst [vmem:[#allocation12 + $0xa8] sm:$0xff] %v559_v62 }
 0x18e   :  { %v507_v1 = vpop.f32.mrb[16].mxu0  ;;  %v563_v2 = vpop.f32.mrb[16].mxu1 }
 0x18f   :  { %v508_v3 = vadd.f32 %v1316_v17, %v507_v1  ;;  %v730_v5 = vpop.f32.mrb[17].mxu0  ;;  %v564_v12 = vadd.f32 %v1316_v17, %v563_v2  ;;  %v758_v6 = vpop.f32.mrb[17].mxu1 }
 0x190   :  { %v510_v7 = vpop.f32.mrb[18].mxu0  ;;  %v566_v8 = vpop.f32.mrb[18].mxu1 }
 0x191   :  { %585 = vst [vmem:[#allocation12 + $0x40] sm:$0xff] %v508_v3  ;;  %v511_v9 = vadd.f32 %v1316_v17, %v510_v7  ;;  %v731_v10 = vpop.f32.mrb[19].mxu0  ;;  %599 = vst [vmem:[#allocation12 + $0xb0] sm:$0xff] %v564_v12  ;;  %v567_v11 = vadd.f32 %v1316_v17, %v566_v8  ;;  %v759_v13 = vpop.f32.mrb[19].mxu1 }
 0x193   :  { %586 = vst [vmem:[#allocation12 + $0x48] sm:$0xff] %v511_v9  ;;  %600 = vst [vmem:[#allocation12 + $0xb8] sm:$0xff] %v567_v11 }
 0x196   :  { %v515_v14 = vpop.f32.mrb[20].mxu0  ;;  %v571_v15 = vpop.f32.mrb[20].mxu1 }
 0x197   :  { %v516_v16 = vadd.f32 %v1316_v17, %v515_v14  ;;  %v734_v18 = vpop.f32.mrb[21].mxu0  ;;  %v572_v19 = vadd.f32 %v1316_v17, %v571_v15  ;;  %v762_v20 = vpop.f32.mrb[21].mxu1 }
 0x198   :  { %v518_v21 = vpop.f32.mrb[22].mxu0  ;;  %v574_v22 = vpop.f32.mrb[22].mxu1 }
 0x199   :  { %587 = vst [vmem:[#allocation12 + $0x50] sm:$0xff] %v516_v16  ;;  %v519_v23 = vadd.f32 %v1316_v17, %v518_v21  ;;  %v735_v24 = vpop.f32.mrb[23].mxu0  ;;  %601 = vst [vmem:[#allocation12 + $0xc0] sm:$0xff] %v572_v19  ;;  %v763_v25 = vpop.f32.mrb[23].mxu1 }
 0x19b   :  { %588 = vst [vmem:[#allocation12 + $0x58] sm:$0xff] %v519_v23 }
 0x19e   :  { %v523_v0 = vpop.f32.mrb[24].mxu0 }
 0x19f   :  { %v524_v26 = vadd.f32 %v1316_v17, %v523_v0  ;;  %v738_v27 = vpop.f32.mrb[25].mxu0 }
 0x1a0   :  { %v526_v28 = vpop.f32.mrb[26].mxu0 }
 0x1a1   :  { %589 = vst [vmem:[#allocation12 + $0x60] sm:$0xff] %v524_v26  ;;  %v527_v29 = vadd.f32 %v1316_v17, %v526_v28  ;;  %v739_v30 = vpop.f32.mrb[27].mxu0 }
 0x1a3   :  { %590 = vst [vmem:[#allocation12 + $0x68] sm:$0xff] %v527_v29 }
 0x1a4   :  { %904 = shalt.err (!%p901_p8)
}
 0x1a5   :  { %s905_s29 = scalar_lea.hbm %s1364_s6, 3200 }
 0x1a6   :  { %p906_p9 = scmp.ne.s32.totalorder %s1364_s6, %s905_s29  ;;  %p909_p10 = scmp.lt.u32.totalorder %s905_s29, %s1364_s6 }
 0x1a8   :  { %p911_p11 = pnand %p909_p10, %p906_p9 }
 0x1aa   :  { %914 = shalt.err (!%p911_p11)
}
 0x1ab   :  { %613 = dma.vmem_to_hbm [thread:$0]  %s608_s25, 3200, %s1364_s6, [#allocation6], %s924_s7, %s924_s7, %s925_s8  }
 0x1ac   :  { %921 = dma.done.wait [#allocation6], 3200  }
 0x1ad   :  { %922 = vsyncadd [#allocation6], 4294964096 }
 0x1ae   :  { %617 = vsyncpa [#allocation5], 1 }
 0x1af   :  { %618 = vsyncpa [#allocation8], 1 }
 0x1b0   :  { %619 = vsyncpa [#allocation11], 1 }
 0x1b1   :  { %620 = vsyncpa [#allocation6], 1 }

</bundles_post_ra>
